<compile_context>
chip_gen: v6e
topology: v6e:2x2x1
jax: 0.10.0
libtpu: 0.0.40
codegen_flags: <defaults>
</compile_context>

<pallas_src>
import functools

import numpy as np
import jax
import jax.numpy as jnp
from jax import lax
from jax.experimental import pallas as pl
from jax.experimental.pallas import tpu as pltpu


# ---------------------------------------------------------------------------
# Fused kernel: one grid step == S batch samples, all activations in VMEM.
# ---------------------------------------------------------------------------
def _darts_fused_kernel(x_ref, noise_ref, *rest, depth, S, HW):
    """rest = [wT_0, b_0, ..., wT_{depth-1}, b_{depth-1},
               bn_scale, bn_shift, lin_w, lin_b, out_ref]

    Layout: activations are (channels, S*HW); pixels ride the lane axis.
    """
    out_ref = rest[-1]
    lin_w_ref, lin_b_ref = rest[-3], rest[-2]
    bn_scale_ref, bn_shift_ref = rest[-5], rest[-4]
    layer_refs = rest[:2 * depth]

    h = x_ref[...]                                     # (C_in, S*HW)
    for d in range(depth):                             # static unroll, depth small
        w_ref, b_ref = layer_refs[2 * d], layer_refs[2 * d + 1]
        # all `width` cells of this layer fused into one matmul; the alpha
        # softmax weight (and the <=0.01 zero branch) is folded into w/b.
        y = jnp.dot(w_ref[...], h, preferred_element_type=jnp.float32)
        y = jnp.maximum(y + b_ref[...], 0.0)           # cell ReLU
        # tmp + torch.rand(tmp.shape) * 2e-5  (noise streamed in, lane-dense)
        h = y + noise_ref[d] * jnp.float32(2e-05)      # (C_layer, S*HW)

    # classifier: BatchNorm2d (inference affine) -> Dropout2d (identity, eval)
    #             -> AdaptiveMaxPool2d(1) -> Flatten -> Linear
    hn = h * bn_scale_ref[...] + bn_shift_ref[...]     # (C_final, S*HW)

    # per-sample global max pool: lane-axis reduce over each 128-aligned slab
    cols = []
    for s in range(S):                                 # static, S small
        seg = hn[:, s * HW:(s + 1) * HW]               # static lane-aligned slice
        cols.append(jnp.max(seg, axis=-1, keepdims=True))
    pooled = jnp.concatenate(cols, axis=-1)            # (C_final, S)

    # one (S, C_final) x (C_final, n_pad) matmul for all S samples
    logits = lax.dot_general(
        pooled, lin_w_ref[...],
        dimension_numbers=(((0,), (0,)), ((), ())),
        preferred_element_type=jnp.float32) + lin_b_ref[...]
    out_ref[...] = logits                              # lane-dense (S, n_pad) store


# ---------------------------------------------------------------------------
# Network wrapper (param containers + trace-time folding; Pallas does compute)
# ---------------------------------------------------------------------------
class DARTSNetworkPallas:
    def __init__(self, C_in, n_classes, n_population, depth=3,
                 cell_C_out=8, key=jax.random.PRNGKey(0)):
        assert n_population % depth == 0
        self.depth = depth
        self.width = n_population // depth
        self.cell_C_out = cell_C_out
        self.n_classes = n_classes
        self.C_layer = self.width * cell_C_out         # channels of every layer out

        # alphas initialized to ones (as in the PyTorch module)
        self.alphas = np.ones((depth, self.width), dtype=np.float32)

        # per-layer input channels (each layer concatenates `width` cells)
        C_ins = [C_in] + [0] * depth
        self.cell_params = []
        keys = jax.random.split(key, n_population + 1)
        for i in range(n_population):
            prev_l = i // self.width
            cin = C_ins[prev_l]
            kw, kb = jax.random.split(keys[i])
            w = (jax.random.normal(kw, (cin, cell_C_out), jnp.float32)
                 * (1.0 / np.sqrt(max(cin, 1))))
            b = jax.random.normal(kb, (cell_C_out,), jnp.float32) * 0.01
            self.cell_params.append((w, b))
            C_ins[1 + prev_l] += cell_C_out
        self.C_final = C_ins[-1]

        # classifier params: BatchNorm2d defaults (inference) + Linear
        self.bn_gamma = jnp.ones((self.C_final,), jnp.float32)
        self.bn_beta = jnp.zeros((self.C_final,), jnp.float32)
        self.bn_mean = jnp.zeros((self.C_final,), jnp.float32)
        self.bn_var = jnp.ones((self.C_final,), jnp.float32)
        kl, kbl = jax.random.split(keys[-1])
        self.lin_w = (jax.random.normal(kl, (self.C_final, n_classes), jnp.float32)
                      * (1.0 / np.sqrt(self.C_final)))
        self.lin_b = jax.random.normal(kbl, (n_classes,), jnp.float32) * 0.01

    def _fold_layer_params(self):
        """Fuse the `width` cells of each layer into one transposed
        (width*C_out, Cin) weight (+ (width*C_out, 1) bias), folding the alpha
        softmax weight into the rows.  Cells with weight <= 0.01 get zero rows
        (== torch.zeros branch, since relu(0) == 0)."""
        a = self.alphas
        soft = np.exp(a - a.max(axis=1, keepdims=True))
        soft = soft / soft.sum(axis=1, keepdims=True)

        folded = []
        for i in range(self.depth):
            wts, bts = [], []
            for j in range(self.width):
                w, b = self.cell_params[i * self.width + j]   # (cin, C_out), (C_out,)
                aij = float(soft[i, j])
                if aij > 0.01:
                    wts.append((w * aij).T)                   # (C_out, cin)
                    bts.append(b * aij)
                else:
                    wts.append(jnp.zeros_like(w).T)
                    bts.append(jnp.zeros_like(b))
            folded.append((jnp.concatenate(wts, axis=0),      # (width*C_out, cin)
                           jnp.concatenate(bts).reshape(-1, 1)))
        return folded

    def forward(self, x_nchw, noise_key=None, samples_per_step=None):
        N, C_in, H, W = x_nchw.shape
        HW = H * W
        S = N if samples_per_step is None else samples_per_step
        assert N % S == 0
        if S != N:   # only needed when the batch is tiled across grid steps
            assert S % 8 == 0 and (S * HW) % 128 == 0

        # NCHW -> (C_in, N*HW): pixels (and samples) ride the lane axis.
        x = x_nchw.astype(jnp.float32).reshape(N, C_in, HW)
        x_cp = jnp.transpose(x, (1, 0, 2)).reshape(C_in, N * HW)

        folded = self._fold_layer_params()

        eps = jnp.float32(1e-5)
        bn_scale = (self.bn_gamma * jax.lax.rsqrt(self.bn_var + eps)).reshape(-1, 1)
        bn_shift = (self.bn_beta - self.bn_mean * bn_scale[:, 0]).reshape(-1, 1)

        # pad the classifier output to a full 128-lane tile (sliced back below)
        n_cls = self.n_classes
        n_pad = max(128, ((n_cls + 127) // 128) * 128)
        lin_w_pad = jnp.zeros((self.C_final, n_pad), jnp.float32)
        lin_w_pad = lin_w_pad.at[:, :n_cls].set(self.lin_w)
        lin_b_pad = jnp.zeros((1, n_pad), jnp.float32)
        lin_b_pad = lin_b_pad.at[0, :n_cls].set(self.lin_b)

        # host-side uniform [0,1) noise (torch.rand equivalent), lane-dense.
        if noise_key is None:
            noise_key = jax.random.PRNGKey(0)
        noise = jax.random.uniform(
            noise_key, (self.depth, self.C_layer, N * HW), jnp.float32)

        def full_spec(arr):
            nd = arr.ndim
            return pl.BlockSpec(arr.shape, lambda i, _nd=nd: (0,) * _nd)

        in_specs = [
            pl.BlockSpec((C_in, S * HW), lambda i: (0, i)),                   # x slab
            pl.BlockSpec((self.depth, self.C_layer, S * HW),
                         lambda i: (0, 0, i)),                                # noise slab
        ]
        operands = [x_cp, noise]
        for (wt, bt) in folded:                                               # resident params
            in_specs += [full_spec(wt), full_spec(bt)]
            operands += [wt, bt]
        in_specs += [full_spec(bn_scale), full_spec(bn_shift),
                     full_spec(lin_w_pad), full_spec(lin_b_pad)]
        operands += [bn_scale, bn_shift, lin_w_pad, lin_b_pad]

        out = pl.pallas_call(
            functools.partial(_darts_fused_kernel,
                              depth=self.depth, S=S, HW=HW),
            out_shape=jax.ShapeDtypeStruct((N, n_pad), jnp.float32),
            grid_spec=pltpu.PrefetchScalarGridSpec(
                num_scalar_prefetch=0,
                grid=(N // S,),
                in_specs=in_specs,
                # per-step lane-dense output tile -> batch axis can be parallel
                out_specs=pl.BlockSpec((S, n_pad), lambda i: (i, 0)),
            ),
            compiler_params=pltpu.CompilerParams(
                dimension_semantics=("parallel",)),
        )(*operands)
        return out[:, :n_cls]


if __name__ == "__main__":
    root_key = jax.random.PRNGKey(0)
    k_x, k_params, k_noise = jax.random.split(root_key, 3)

    # small config: C_in=4, n_classes=10, population of 6 cells, depth=3 (width=2)
    C_in, n_classes, n_population, depth = 4, 10, 6, 3
    net = DARTSNetworkPallas(C_in, n_classes, n_population, depth=depth,
                             cell_C_out=8, key=k_params)

    x = jax.random.normal(k_x, (2, C_in, 16, 16), jnp.float32)  # NCHW like PyTorch
    out = net.forward(x, noise_key=k_noise)
    out = jax.block_until_ready(out)
    assert out.shape == (2, n_classes)
    assert bool(jnp.all(jnp.isfinite(out)))
    print("KERNEL_OK")
</pallas_src>

<mosaic_0001>
module attributes {stable_mosaic.version = 11 : i64} {
  func.func @_darts_fused_kernel(%arg0: i32, %arg1: memref<4x512xf32, #tpu.memory_space<vmem>>, %arg2: memref<3x16x512xf32, #tpu.memory_space<vmem>>, %arg3: memref<16x4xf32, #tpu.memory_space<vmem>>, %arg4: memref<16x1xf32, #tpu.memory_space<vmem>>, %arg5: memref<16x16xf32, #tpu.memory_space<vmem>>, %arg6: memref<16x1xf32, #tpu.memory_space<vmem>>, %arg7: memref<16x16xf32, #tpu.memory_space<vmem>>, %arg8: memref<16x1xf32, #tpu.memory_space<vmem>>, %arg9: memref<16x1xf32, #tpu.memory_space<vmem>>, %arg10: memref<16x1xf32, #tpu.memory_space<vmem>>, %arg11: memref<16x128xf32, #tpu.memory_space<vmem>>, %arg12: memref<1x128xf32, #tpu.memory_space<vmem>>, %arg13: memref<2x128xf32, #tpu.memory_space<vmem>>) attributes {dimension_semantics = [#tpu.dimension_semantics<parallel>], iteration_bounds = array<i64: 1>, scalar_prefetch = 0 : i64, scratch_operands = 0 : i64, tpu.core_type = #tpu.core_type<tc>, window_params = [{transform_indices = @transform_0, window_bounds = array<i64: 4, 512>}, {transform_indices = @transform_1, window_bounds = array<i64: 3, 16, 512>}, {pipeline_mode = #tpu.pipeline_mode<synchronous>, transform_indices = @transform_2, window_bounds = array<i64: 16, 4>}, {pipeline_mode = #tpu.pipeline_mode<synchronous>, transform_indices = @transform_3, window_bounds = array<i64: 16, 1>}, {pipeline_mode = #tpu.pipeline_mode<synchronous>, transform_indices = @transform_4, window_bounds = array<i64: 16, 16>}, {pipeline_mode = #tpu.pipeline_mode<synchronous>, transform_indices = @transform_5, window_bounds = array<i64: 16, 1>}, {pipeline_mode = #tpu.pipeline_mode<synchronous>, transform_indices = @transform_6, window_bounds = array<i64: 16, 16>}, {pipeline_mode = #tpu.pipeline_mode<synchronous>, transform_indices = @transform_7, window_bounds = array<i64: 16, 1>}, {pipeline_mode = #tpu.pipeline_mode<synchronous>, transform_indices = @transform_8, window_bounds = array<i64: 16, 1>}, {pipeline_mode = #tpu.pipeline_mode<synchronous>, transform_indices = @transform_9, window_bounds = array<i64: 16, 1>}, {pipeline_mode = #tpu.pipeline_mode<synchronous>, transform_indices = @transform_10, window_bounds = array<i64: 16, 128>}, {pipeline_mode = #tpu.pipeline_mode<synchronous>, transform_indices = @transform_11, window_bounds = array<i64: 1, 128>}, {transform_indices = @transform_12, window_bounds = array<i64: 2, 128>}]} {
    %c0 = arith.constant 0 : index
    %c0_0 = arith.constant 0 : index
    %0 = vector.load %arg1[%c0, %c0_0] : memref<4x512xf32, #tpu.memory_space<vmem>>, vector<4x512xf32>
    %c0_1 = arith.constant 0 : index
    %c0_2 = arith.constant 0 : index
    %1 = vector.load %arg3[%c0_1, %c0_2] : memref<16x4xf32, #tpu.memory_space<vmem>>, vector<16x4xf32>
    %cst = arith.constant dense<0.000000e+00> : vector<16x512xf32>
    %2 = tpu.matmul %1, %0, %cst {dimension_numbers = #tpu.dot_dimension_numbers<[1], [0], [0], [1], [0, 0, 1, 1], [], []>} : vector<16x4xf32>, vector<4x512xf32>, vector<16x512xf32> -> vector<16x512xf32>
    %c0_3 = arith.constant 0 : index
    %c0_4 = arith.constant 0 : index
    %3 = vector.load %arg4[%c0_3, %c0_4] : memref<16x1xf32, #tpu.memory_space<vmem>>, vector<16x1xf32>
    %4 = vector.broadcast %3 : vector<16x1xf32> to vector<16x512xf32>
    %5 = arith.addf %2, %4 : vector<16x512xf32>
    %cst_5 = arith.constant 0.000000e+00 : f32
    %6 = vector.broadcast %cst_5 : f32 to vector<16x512xf32>
    %7 = arith.maximumf %5, %6 : vector<16x512xf32>
    %c0_6 = arith.constant 0 : index
    %c0_7 = arith.constant 0 : index
    %c0_8 = arith.constant 0 : index
    %8 = vector.load %arg2[%c0_6, %c0_7, %c0_8] : memref<3x16x512xf32, #tpu.memory_space<vmem>>, vector<1x16x512xf32>
    %9 = vector.shape_cast %8 : vector<1x16x512xf32> to vector<16x512xf32>
    %cst_9 = arith.constant 2.000000e-05 : f32
    %10 = vector.broadcast %cst_9 : f32 to vector<16x512xf32>
    %11 = arith.mulf %9, %10 : vector<16x512xf32>
    %12 = arith.addf %7, %11 : vector<16x512xf32>
    %c0_10 = arith.constant 0 : index
    %c0_11 = arith.constant 0 : index
    %13 = vector.load %arg5[%c0_10, %c0_11] : memref<16x16xf32, #tpu.memory_space<vmem>>, vector<16x16xf32>
    %cst_12 = arith.constant dense<0.000000e+00> : vector<16x512xf32>
    %14 = tpu.matmul %13, %12, %cst_12 {dimension_numbers = #tpu.dot_dimension_numbers<[1], [0], [0], [1], [0, 0, 1, 1], [], []>} : vector<16x16xf32>, vector<16x512xf32>, vector<16x512xf32> -> vector<16x512xf32>
    %c0_13 = arith.constant 0 : index
    %c0_14 = arith.constant 0 : index
    %15 = vector.load %arg6[%c0_13, %c0_14] : memref<16x1xf32, #tpu.memory_space<vmem>>, vector<16x1xf32>
    %16 = vector.broadcast %15 : vector<16x1xf32> to vector<16x512xf32>
    %17 = arith.addf %14, %16 : vector<16x512xf32>
    %cst_15 = arith.constant 0.000000e+00 : f32
    %18 = vector.broadcast %cst_15 : f32 to vector<16x512xf32>
    %19 = arith.maximumf %17, %18 : vector<16x512xf32>
    %c1 = arith.constant 1 : index
    %c0_16 = arith.constant 0 : index
    %c0_17 = arith.constant 0 : index
    %20 = vector.load %arg2[%c1, %c0_16, %c0_17] : memref<3x16x512xf32, #tpu.memory_space<vmem>>, vector<1x16x512xf32>
    %21 = vector.shape_cast %20 : vector<1x16x512xf32> to vector<16x512xf32>
    %cst_18 = arith.constant 2.000000e-05 : f32
    %22 = vector.broadcast %cst_18 : f32 to vector<16x512xf32>
    %23 = arith.mulf %21, %22 : vector<16x512xf32>
    %24 = arith.addf %19, %23 : vector<16x512xf32>
    %c0_19 = arith.constant 0 : index
    %c0_20 = arith.constant 0 : index
    %25 = vector.load %arg7[%c0_19, %c0_20] : memref<16x16xf32, #tpu.memory_space<vmem>>, vector<16x16xf32>
    %cst_21 = arith.constant dense<0.000000e+00> : vector<16x512xf32>
    %26 = tpu.matmul %25, %24, %cst_21 {dimension_numbers = #tpu.dot_dimension_numbers<[1], [0], [0], [1], [0, 0, 1, 1], [], []>} : vector<16x16xf32>, vector<16x512xf32>, vector<16x512xf32> -> vector<16x512xf32>
    %c0_22 = arith.constant 0 : index
    %c0_23 = arith.constant 0 : index
    %27 = vector.load %arg8[%c0_22, %c0_23] : memref<16x1xf32, #tpu.memory_space<vmem>>, vector<16x1xf32>
    %28 = vector.broadcast %27 : vector<16x1xf32> to vector<16x512xf32>
    %29 = arith.addf %26, %28 : vector<16x512xf32>
    %cst_24 = arith.constant 0.000000e+00 : f32
    %30 = vector.broadcast %cst_24 : f32 to vector<16x512xf32>
    %31 = arith.maximumf %29, %30 : vector<16x512xf32>
    %c2 = arith.constant 2 : index
    %c0_25 = arith.constant 0 : index
    %c0_26 = arith.constant 0 : index
    %32 = vector.load %arg2[%c2, %c0_25, %c0_26] : memref<3x16x512xf32, #tpu.memory_space<vmem>>, vector<1x16x512xf32>
    %33 = vector.shape_cast %32 : vector<1x16x512xf32> to vector<16x512xf32>
    %cst_27 = arith.constant 2.000000e-05 : f32
    %34 = vector.broadcast %cst_27 : f32 to vector<16x512xf32>
    %35 = arith.mulf %33, %34 : vector<16x512xf32>
    %36 = arith.addf %31, %35 : vector<16x512xf32>
    %c0_28 = arith.constant 0 : index
    %c0_29 = arith.constant 0 : index
    %37 = vector.load %arg9[%c0_28, %c0_29] : memref<16x1xf32, #tpu.memory_space<vmem>>, vector<16x1xf32>
    %38 = vector.broadcast %37 : vector<16x1xf32> to vector<16x512xf32>
    %39 = arith.mulf %36, %38 : vector<16x512xf32>
    %c0_30 = arith.constant 0 : index
    %c0_31 = arith.constant 0 : index
    %40 = vector.load %arg10[%c0_30, %c0_31] : memref<16x1xf32, #tpu.memory_space<vmem>>, vector<16x1xf32>
    %41 = vector.broadcast %40 : vector<16x1xf32> to vector<16x512xf32>
    %42 = arith.addf %39, %41 : vector<16x512xf32>
    %43 = vector.extract_strided_slice %42 {offsets = [0, 0], sizes = [16, 256], strides = [1, 1]} : vector<16x512xf32> to vector<16x256xf32>
    %cst_32 = arith.constant dense<0xFF800000> : vector<16xf32>
    %44 = vector.multi_reduction <maximumf>, %43, %cst_32 [1] : vector<16x256xf32> to vector<16xf32>
    %45 = vector.shape_cast %44 : vector<16xf32> to vector<16x1xf32>
    %46 = vector.extract_strided_slice %42 {offsets = [0, 256], sizes = [16, 256], strides = [1, 1]} : vector<16x512xf32> to vector<16x256xf32>
    %cst_33 = arith.constant dense<0xFF800000> : vector<16xf32>
    %47 = vector.multi_reduction <maximumf>, %46, %cst_33 [1] : vector<16x256xf32> to vector<16xf32>
    %48 = vector.shape_cast %47 : vector<16xf32> to vector<16x1xf32>
    %49 = tpu.concatenate %45, %48 in 1 : vector<16x1xf32>, vector<16x1xf32> -> vector<16x2xf32>
    %c0_34 = arith.constant 0 : index
    %c0_35 = arith.constant 0 : index
    %50 = vector.load %arg11[%c0_34, %c0_35] : memref<16x128xf32, #tpu.memory_space<vmem>>, vector<16x128xf32>
    %cst_36 = arith.constant dense<0.000000e+00> : vector<2x128xf32>
    %51 = tpu.matmul %49, %50, %cst_36 {dimension_numbers = #tpu.dot_dimension_numbers<[0], [0], [1], [1], [0, 1, 1, 1], [], []>} : vector<16x2xf32>, vector<16x128xf32>, vector<2x128xf32> -> vector<2x128xf32>
    %c0_37 = arith.constant 0 : index
    %c0_38 = arith.constant 0 : index
    %52 = vector.load %arg12[%c0_37, %c0_38] : memref<1x128xf32, #tpu.memory_space<vmem>>, vector<1x128xf32>
    %53 = vector.broadcast %52 : vector<1x128xf32> to vector<2x128xf32>
    %54 = arith.addf %51, %53 : vector<2x128xf32>
    %c0_39 = arith.constant 0 : index
    %c0_40 = arith.constant 0 : index
    %55 = vector.load %arg13[%c0_39, %c0_40] : memref<2x128xf32, #tpu.memory_space<vmem>>, vector<2x128xf32>
    tpu.vector_store %arg13[%c0_39, %c0_40], %54 {strides = array<i32>} : memref<2x128xf32, #tpu.memory_space<vmem>>, vector<2x128xf32>,
    return
  }
  func.func @transform_0(%arg0: i32) -> (i32, i32) {
    %c0_i32 = arith.constant 0 : i32
    %c0_i32_0 = arith.constant 0 : i32
    return %c0_i32, %arg0 : i32, i32
  }
  func.func @transform_1(%arg0: i32) -> (i32, i32, i32) {
    %c0_i32 = arith.constant 0 : i32
    %c0_i32_0 = arith.constant 0 : i32
    %c0_i32_1 = arith.constant 0 : i32
    return %c0_i32, %c0_i32_0, %arg0 : i32, i32, i32
  }
  func.func @transform_2(%arg0: i32) -> (i32, i32) {
    %c0_i32 = arith.constant 0 : i32
    %c0_i32_0 = arith.constant 0 : i32
    %c0_i32_1 = arith.constant 0 : i32
    return %c0_i32, %c0_i32_0 : i32, i32
  }
  func.func @transform_3(%arg0: i32) -> (i32, i32) {
    %c0_i32 = arith.constant 0 : i32
    %c0_i32_0 = arith.constant 0 : i32
    %c0_i32_1 = arith.constant 0 : i32
    return %c0_i32, %c0_i32_0 : i32, i32
  }
  func.func @transform_4(%arg0: i32) -> (i32, i32) {
    %c0_i32 = arith.constant 0 : i32
    %c0_i32_0 = arith.constant 0 : i32
    %c0_i32_1 = arith.constant 0 : i32
    return %c0_i32, %c0_i32_0 : i32, i32
  }
  func.func @transform_5(%arg0: i32) -> (i32, i32) {
    %c0_i32 = arith.constant 0 : i32
    %c0_i32_0 = arith.constant 0 : i32
    %c0_i32_1 = arith.constant 0 : i32
    return %c0_i32, %c0_i32_0 : i32, i32
  }
  func.func @transform_6(%arg0: i32) -> (i32, i32) {
    %c0_i32 = arith.constant 0 : i32
    %c0_i32_0 = arith.constant 0 : i32
    %c0_i32_1 = arith.constant 0 : i32
    return %c0_i32, %c0_i32_0 : i32, i32
  }
  func.func @transform_7(%arg0: i32) -> (i32, i32) {
    %c0_i32 = arith.constant 0 : i32
    %c0_i32_0 = arith.constant 0 : i32
    %c0_i32_1 = arith.constant 0 : i32
    return %c0_i32, %c0_i32_0 : i32, i32
  }
  func.func @transform_8(%arg0: i32) -> (i32, i32) {
    %c0_i32 = arith.constant 0 : i32
    %c0_i32_0 = arith.constant 0 : i32
    %c0_i32_1 = arith.constant 0 : i32
    return %c0_i32, %c0_i32_0 : i32, i32
  }
  func.func @transform_9(%arg0: i32) -> (i32, i32) {
    %c0_i32 = arith.constant 0 : i32
    %c0_i32_0 = arith.constant 0 : i32
    %c0_i32_1 = arith.constant 0 : i32
    return %c0_i32, %c0_i32_0 : i32, i32
  }
  func.func @transform_10(%arg0: i32) -> (i32, i32) {
    %c0_i32 = arith.constant 0 : i32
    %c0_i32_0 = arith.constant 0 : i32
    %c0_i32_1 = arith.constant 0 : i32
    return %c0_i32, %c0_i32_0 : i32, i32
  }
  func.func @transform_11(%arg0: i32) -> (i32, i32) {
    %c0_i32 = arith.constant 0 : i32
    %c0_i32_0 = arith.constant 0 : i32
    %c0_i32_1 = arith.constant 0 : i32
    return %c0_i32, %c0_i32_0 : i32, i32
  }
  func.func @transform_12(%arg0: i32) -> (i32, i32) {
    %c0_i32 = arith.constant 0 : i32
    %c0_i32_0 = arith.constant 0 : i32
    return %arg0, %c0_i32 : i32, i32
  }
}

</mosaic_0001>

<bundles_post_ra>
// kernel: tpu_custom_call.1
= control target key start
LH: loop header
LB: loop body
LE: loop exit
PB: predicated region body
PF: predicated region fallthrough
CT: control target
= control target key end

     0   :  { %17 = vsyncpa [#allocation3], 0  ;;  %s1126_s0 = inlined_call_operand.vmem [shape: f32[4,512], index: 0, kind: input, shape index: {}]   ;;  %s1127_s1 = inlined_call_operand.hbm [shape: f32[3,16,512], index: 1, kind: input, shape index: {}]   ;;  %s1128_s2 = inlined_call_operand.vmem [shape: f32[16,4], index: 2, kind: input, shape index: {}]   ;;  %s1129_s3 = inlined_call_operand.vmem [shape: f32[16,1], index: 3, kind: input, shape index: {}]   ;;  %s1130_s4 = inlined_call_operand.vmem [shape: f32[16,16], index: 4, kind: input, shape index: {}]   ;;  %s1131_s5 = inlined_call_operand.vmem [shape: f32[16,1], index: 5, kind: input, shape index: {}]   ;;  %s1132_s6 = inlined_call_operand.vmem [shape: f32[16,16], index: 6, kind: input, shape index: {}]   ;;  %s1133_s7 = inlined_call_operand.vmem [shape: f32[16,1], index: 7, kind: input, shape index: {}]   ;;  %s1134_s8 = inlined_call_operand.vmem [shape: f32[16,1], index: 8, kind: input, shape index: {}]   ;;  %s1135_s9 = inlined_call_operand.vmem [shape: f32[16,1], index: 9, kind: input, shape index: {}]   ;;  %s1136_s10 = inlined_call_operand.vmem [shape: f32[16,128], index: 10, kind: input, shape index: {}]   ;;  %s1137_s11 = inlined_call_operand.vmem [shape: f32[1,128], index: 11, kind: input, shape index: {}]   ;;  %s1138_s12 = inlined_call_operand.hbm [shape: f32[2,128], index: 12, kind: output, shape index: {}]  }
   0x1   :  { %18 = vsyncpa [#allocation4], 0  ;;  %s961_s21 = smov [#allocation2]  }
   0x2   :  { %s26_s22 = sshll.u32 %s961_s21, 4  ;;  %s27_s22 = int_to_ptr.vmem [resolvable:$true] %s26_s22 }
   0x3   :  { %s925_s23 = scalar_lea.vmem %s27_s22, 3072  ;;  %p930_p1 = scmp.lt.s32.totalorder %s27_s22, %s27_s22 }
   0x4   :  { %p926_p0 = scmp.ne.s32.totalorder %s27_s22, %s925_s23  ;;  %p931_p2 = scmp.lt.s32.totalorder %s925_s23, %s925_s23 }
   0x6   :  { %p932_p3 = por %p931_p2, %p930_p1 }
   0x8   :  { %p933_p4 = pnand %p932_p3, %p926_p0 }
   0xa   :  { %936 = shalt.err (!%p933_p4)
}
   0xb   :  { %s962_s24 = smov 512   ;;  %s963_s25 = smov 32  }
   0xc   :  { %32 = dma.hbm_to_vmem [thread:$0]  %s1127_s1, 3072, %s27_s22, [#allocation3], %s962_s24, %s962_s24, %s963_s25  }
   0xd   :  { %957 = dma.done.wait [#allocation3], 3072  }
   0xe   :  { %958 = vsyncadd [#allocation3], 4294964224  ;;  %v964_v0 = vmov 0.0   ;;  %v965_v1 = vmov 0   ;;  %v56_v2 = vld [vmem:[%s1126_s0] sm:$0xff]  ;;  %vm83_vm0 = vcmask 1043456  }
   0xf   :  { %156 = vmatprep.mubr.f32.mxu0 %v964_v0  ;;  %233 = vmatprep.mubr.f32.mxu1 %v964_v0  ;;  %v57_v3 = vld [vmem:[%s1126_s0 + $0x8] sm:$0xff]  ;;  %v74_v4 = vcombine.high %v56_v2, %v56_v2  ;;  %v58_v7 = vld [vmem:[%s1128_s2] sm:$0xff]  ;;  %vm76_vm1 = vcmask 31744   ;;  %v257_v24 = vld [vmem:[#allocation2 + $0x18] sm:$0xff]  ;;  %vm292_vm2 = vcmask 130048   ;;  %vm966_vm3 = vmmov 0  }
  0x10   :  { %913 = vset.pattern.permute.xlu0 %v965_v1  ;;  %914 = vset.pattern.permute.xlu1 %v965_v1  ;;  %v75_v5 = vcombine.high %v57_v3, %v57_v3  ;;  %v61_v6 = vld [vmem:[%s1129_s3 + $0x8] sm:$0xff]  ;;  %v60_v8 = vld [vmem:[%s1129_s3] sm:$0xff]  ;;  %v261_v29 = vld [vmem:[#allocation2 + $0x38] sm:$0xff]  ;;  %v265_v33 = vmul.f32 2e-05, %v257_v24  ;;  %vm745_vm4 = vcmask 7168  }
  0x11   :  { %69 = vperm.xlu0 %913, %v61_v6   ;;  %878 = vmatprep.subr.msk.mxu0 %vm83_vm0, %v74_v4  ;;  %v59_v9 = vld [vmem:[%s1128_s2 + $0x8] sm:$0xff]  ;;  %v488_v10 = vld [vmem:[%s1133_s7] sm:$0xff]  ;;  %v260_v35 = vld [vmem:[#allocation2 + $0x30] sm:$0xff]  ;;  %v269_v47 = vmul.f32 2e-05, %v261_v29  ;;  %s967_s21 = smov [#allocation5]  }
  0x12   :  { %882 = vmatprep.subr.msk.mxu1 %vm83_vm0, %v75_v5  ;;  %879 = vmatpush1.msk.msra.mxu0 %vm83_vm0, %v56_v2  ;;  %v693_v11 = vld [vmem:[%s1134_s8] sm:$0xff]  ;;  %v281_v13 = vld [vmem:[%s1131_s5 + $0x8] sm:$0xff]  ;;  %v256_v43 = vld [vmem:[#allocation2 + $0x10] sm:$0xff]  ;;  %v268_v51 = vmul.f32 2e-05, %v260_v35  ;;  %s869_s3 = sshll.u32 %s967_s21, 4  ;;  %s870_s3 = int_to_ptr.vmem [resolvable:$true] %s869_s3 }
  0x13   :  { %883 = vmatpush1.msk.msra.mxu1 %vm83_vm0, %v57_v3  ;;  %880 = vmatmul.mubr.msk.f32.vlgmr.msra.gmra.mxu0 %vm76_vm1, %v58_v7  ;;  %v713_v12 = vld [vmem:[%s1135_s9] sm:$0xff]  ;;  %v489_v15 = vld [vmem:[%s1133_s7 + $0x8] sm:$0xff]  ;;  %v264_v59 = vmul.f32 2e-05, %v256_v43  ;;  %v468_v24 = vld [vmem:[#allocation2 + $0x70] sm:$0xff]  ;;  %s937_s22 = scalar_lea.vmem %s870_s3, 32  ;;  %p942_p6 = scmp.lt.s32.totalorder %s870_s3, %s870_s3 }
  0x14   :  { %884 = vmatmul.mubr.msk.f32.vlgmr.msra.gmra.mxu1 %vm76_vm1, %v58_v7  ;;  %162 = vmatprep.mubr.f32.mxu0 %v964_v0  ;;  %v280_v14 = vld [vmem:[%s1131_s5] sm:$0xff]  ;;  %v694_v16 = vld [vmem:[%s1134_s8 + $0x8] sm:$0xff]  ;;  %p938_p5 = scmp.ne.s32.totalorder %s870_s3, %s937_s22  ;;  %p943_p7 = scmp.lt.s32.totalorder %s937_s22, %s937_s22 }
  0x15   :  { %239 = vmatprep.mubr.f32.mxu1 %v964_v0  ;;  %64 = vperm.xlu0 %913, %v60_v8   ;;  %v714_v17 = vld [vmem:[%s1135_s9 + $0x8] sm:$0xff]  ;;  %v258_v34 = vld [vmem:[#allocation2 + $0x20] sm:$0xff] }
  0x16   :  { %289 = vperm.xlu1 %914, %v281_v13   ;;  %v255_v22 = vld [vmem:[#allocation2 + $0x8] sm:$0xff]  ;;  %v254_v42 = vld [vmem:[#allocation2] sm:$0xff]  ;;  %v266_v49 = vmul.f32 2e-05, %v258_v34  ;;  %v465_v13 = vld [vmem:[#allocation2 + $0x58] sm:$0xff]  ;;  %p944_p8 = por %p943_p7, %p942_p6 }
  0x17   :  { %881 = vmatmul.mubr.msk.f32.gmra.mxu0 %vm76_vm1, %v59_v9  ;;  %v259_v28 = vld [vmem:[#allocation2 + $0x28] sm:$0xff]  ;;  %v263_v31 = vmul.f32 2e-05, %v255_v22  ;;  %v262_v57 = vmul.f32 2e-05, %v254_v42  ;;  %v278_v5 = vld [vmem:[%s1130_s4] sm:$0xff] }
  0x18   :  { %885 = vmatmul.mubr.msk.f32.gmra.mxu1 %vm76_vm1, %v59_v9  ;;  %363 = vmatprep.mubr.f32.mxu0 %v964_v0  ;;  %v267_v45 = vmul.f32 2e-05, %v259_v28  ;;  %v279_v6 = vld [vmem:[%s1130_s4 + $0x8] sm:$0xff]  ;;  %v473_v22 = vmul.f32 2e-05, %v465_v13  ;;  %p945_p9 = pnand %p944_p8, %p938_p5 }
  0x19   :  { %440 = vmatprep.mubr.f32.mxu1 %v964_v0  ;;  %492 = vperm.xlu0 %913, %v488_v10  }
  0x1a   :  { %284 = vperm.xlu1 %914, %v280_v14  }
  0x1d   :  { %697 = vperm.xlu0 %913, %v693_v11   ;;  %v463_v11 = vld [vmem:[#allocation2 + $0x48] sm:$0xff] }
  0x1e   :  { %497 = vperm.xlu1 %914, %v489_v15  }
  0x21   :  { %717 = vperm.xlu0 %913, %v713_v12  }
  0x22   :  { %702 = vperm.xlu1 %914, %v694_v16  }
  0x26   :  { %722 = vperm.xlu1 %914, %v714_v17   ;;  %v467_v17 = vld [vmem:[#allocation2 + $0x68] sm:$0xff] }
  0x27   :  { %v475_v34 = vmul.f32 2e-05, %v467_v17 }
  0x8c   :  { %v70_v18 = vpop.permute.xlu0 %69 }
  0x90   :  { %v65_v25 = vpop.permute.xlu0 %64 }
  0x91   :  { %v290_v7 = vpop.permute.xlu1 %289 }
  0x95   :  { %v285_v14 = vpop.permute.xlu1 %284 }
  0xd3   :  { %v158_v19 = vpop.f32.mrf.mxu0 }
  0xd4   :  { %v235_v20 = vpop.f32.mrf.mxu1  ;;  %v159_v36 = vadd.f32 %v158_v19, %v65_v25 }
  0xd5   :  { %v160_v21 = vpop.f32.mrf.mxu0  ;;  %v236_v37 = vadd.f32 %v235_v20, %v65_v25  ;;  %v471_v20 = vmul.f32 2e-05, %v463_v11 }
  0xd6   :  { %v237_v23 = vpop.f32.mrf.mxu1  ;;  %v161_v30 = vadd.f32 %v160_v21, %v65_v25  ;;  %v246_v56 = vmax.f32 %v159_v36, 0.0 }
  0xd7   :  { %v164_v26 = vpop.f32.mrf.mxu0  ;;  %v238_v32 = vadd.f32 %v237_v23, %v65_v25  ;;  %v248_v58 = vmax.f32 %v236_v37, 0.0  ;;  %v466_v23 = vld [vmem:[#allocation2 + $0x60] sm:$0xff] }
  0xd8   :  { %v241_v27 = vpop.f32.mrf.mxu1  ;;  %v165_v38 = vadd.f32 %v164_v26, %v70_v18  ;;  %v247_v52 = vmax.f32 %v161_v30, 0.0  ;;  %v270_v3 = vadd.f32 %v262_v57, %v246_v56  ;;  %v486_v57 = vld [vmem:[%s1132_s6] sm:$0xff] }
  0xd9   :  { %v242_v39 = vadd.f32 %v241_v27, %v70_v18  ;;  %v166_v40 = vpop.f32.mrf.mxu0  ;;  %v249_v53 = vmax.f32 %v238_v32, 0.0  ;;  %v272_v4 = vadd.f32 %v264_v59, %v248_v58  ;;  %v464_v32 = vld [vmem:[#allocation2 + $0x50] sm:$0xff]  ;;  %v487_v58 = vld [vmem:[%s1132_s6 + $0x8] sm:$0xff]  ;;  %v493_v59 = vpop.permute.xlu0 %492 }
  0xda   :  { %v243_v41 = vpop.f32.mrf.mxu1  ;;  %v167_v44 = vadd.f32 %v166_v40, %v70_v18  ;;  %v250_v48 = vmax.f32 %v165_v38, 0.0  ;;  %v271_v1 = vadd.f32 %v263_v31, %v247_v52  ;;  %v462_v31 = vld [vmem:[#allocation2 + $0x40] sm:$0xff]  ;;  %v474_v38 = vmul.f32 2e-05, %v466_v23 }
  0xdb   :  { %v244_v46 = vadd.f32 %v243_v41, %v70_v18  ;;  %v252_v50 = vmax.f32 %v242_v39, 0.0  ;;  %v273_v2 = vadd.f32 %v265_v33, %v249_v53  ;;  %v469_v18 = vld [vmem:[#allocation2 + $0x78] sm:$0xff]  ;;  %v476_v40 = vmul.f32 2e-05, %v468_v24 }
  0xdc   :  { %v251_v54 = vmax.f32 %v167_v44, 0.0  ;;  %v274_v62 = vadd.f32 %v266_v49, %v250_v48  ;;  %v477_v36 = vmul.f32 2e-05, %v469_v18  ;;  %v472_v48 = vmul.f32 2e-05, %v464_v32 }
  0xdd   :  { %v253_v55 = vmax.f32 %v244_v46, 0.0  ;;  %v276_v63 = vadd.f32 %v268_v51, %v252_v50  ;;  %v470_v46 = vmul.f32 2e-05, %v462_v31  ;;  %v698_v13 = vpop.permute.xlu0 %697 }
  0xde   :  { %v275_v60 = vadd.f32 %v267_v45, %v251_v54 }
  0xdf   :  { %v277_v61 = vadd.f32 %v269_v47, %v253_v55 }
  0xe0   :  { %327 = vmatprep.subr.mxu0 %v275_v60  ;;  %v669_v60 = vld [vmem:[#allocation2 + $0x80] sm:$0xff] }
  0xe1   :  { %404 = vmatprep.subr.mxu1 %v277_v61  ;;  %328 = vmatpush1.msra.mxu0 %v274_v62  ;;  %v671_v61 = vld [vmem:[#allocation2 + $0x90] sm:$0xff]  ;;  %v670_v62 = vld [vmem:[#allocation2 + $0x88] sm:$0xff] }
  0xe2   :  { %405 = vmatpush1.msra.mxu1 %v276_v63  ;;  %329 = vmatprep.subr.mxu0 %v271_v1  ;;  %v672_v63 = vld [vmem:[#allocation2 + $0x98] sm:$0xff] }
  0xe3   :  { %406 = vmatprep.subr.mxu1 %v273_v2  ;;  %330 = vmatpush1.msra.mxu0 %v270_v3 }
  0xe4   :  { %407 = vmatpush1.msra.mxu1 %v272_v4  ;;  %886 = vmatmul.mubr.msk.f32.vlgmr.msra.gmra.mxu0 %vm292_vm2, %v278_v5  ;;  %v677_v4 = vmul.f32 2e-05, %v669_v60 }
  0xe5   :  { %888 = vmatmul.mubr.msk.f32.vlgmr.msra.gmra.mxu1 %vm292_vm2, %v278_v5  ;;  %369 = vmatprep.mubr.f32.mxu0 %v964_v0 }
  0xe6   :  { %446 = vmatprep.mubr.f32.mxu1 %v964_v0 }
  0xe8   :  { %887 = vmatmul.mubr.msk.f32.gmra.mxu0 %vm292_vm2, %v279_v6 }
  0xe9   :  { %889 = vmatmul.mubr.msk.f32.gmra.mxu1 %vm292_vm2, %v279_v6  ;;  %570 = vmatprep.mubr.f32.mxu0 %v964_v0  ;;  %v679_v6 = vmul.f32 2e-05, %v671_v61 }
  0xea   :  { %647 = vmatprep.mubr.f32.mxu1 %v964_v0 }
 0x1a4   :  { %v365_v8 = vpop.f32.mrf.mxu0 }
 0x1a5   :  { %v442_v9 = vpop.f32.mrf.mxu1  ;;  %v366_v25 = vadd.f32 %v365_v8, %v285_v14  ;;  %v675_v8 = vld [vmem:[#allocation2 + $0xb0] sm:$0xff] }
 0x1a6   :  { %v367_v10 = vpop.f32.mrf.mxu0  ;;  %v443_v26 = vadd.f32 %v442_v9, %v285_v14  ;;  %v683_v24 = vmul.f32 2e-05, %v675_v8  ;;  %v748_v8 = vld [vmem:[%s1136_s10] sm:$0xff] }
 0x1a7   :  { %v444_v12 = vpop.f32.mrf.mxu1  ;;  %v368_v19 = vadd.f32 %v367_v10, %v285_v14  ;;  %v453_v45 = vmax.f32 %v366_v25, 0.0  ;;  %v678_v10 = vmul.f32 2e-05, %v670_v62 }
 0x1a8   :  { %v371_v15 = vpop.f32.mrf.mxu0  ;;  %v445_v21 = vadd.f32 %v444_v12, %v285_v14  ;;  %v455_v47 = vmax.f32 %v443_v26, 0.0  ;;  %v680_v12 = vmul.f32 2e-05, %v672_v63  ;;  %v498_v14 = vpop.permute.xlu1 %497 }
 0x1a9   :  { %v448_v16 = vpop.f32.mrf.mxu1  ;;  %v372_v27 = vadd.f32 %v371_v15, %v290_v7  ;;  %v454_v41 = vmax.f32 %v368_v19, 0.0  ;;  %v478_v55 = vadd.f32 %v470_v46, %v453_v45  ;;  %v674_v19 = vld [vmem:[#allocation2 + $0xa8] sm:$0xff]  ;;  %v718_v46 = vpop.permute.xlu0 %717 }
 0x1aa   :  { %v449_v28 = vadd.f32 %v448_v16, %v290_v7  ;;  %v373_v29 = vpop.f32.mrf.mxu0  ;;  %v456_v42 = vmax.f32 %v445_v21, 0.0  ;;  %v480_v56 = vadd.f32 %v472_v48, %v455_v47  ;;  %v682_v32 = vmul.f32 2e-05, %v674_v19 }
 0x1ab   :  { %v450_v30 = vpop.f32.mrf.mxu1  ;;  %v374_v33 = vadd.f32 %v373_v29, %v290_v7  ;;  %v457_v37 = vmax.f32 %v372_v27, 0.0  ;;  %v479_v53 = vadd.f32 %v471_v20, %v454_v41  ;;  %v676_v20 = vld [vmem:[#allocation2 + $0xb8] sm:$0xff] }
 0x1ac   :  { %v451_v35 = vadd.f32 %v450_v30, %v290_v7  ;;  %v459_v39 = vmax.f32 %v449_v28, 0.0  ;;  %v481_v54 = vadd.f32 %v473_v22, %v456_v42  ;;  %v673_v7 = vld [vmem:[#allocation2 + $0xa0] sm:$0xff] }
 0x1ad   :  { %v458_v43 = vmax.f32 %v374_v33, 0.0  ;;  %v482_v51 = vadd.f32 %v474_v38, %v457_v37  ;;  %v681_v22 = vmul.f32 2e-05, %v673_v7  ;;  %v749_v7 = vld [vmem:[%s1136_s10 + $0x8] sm:$0xff] }
 0x1ae   :  { %v460_v44 = vmax.f32 %v451_v35, 0.0  ;;  %v484_v52 = vadd.f32 %v476_v40, %v459_v39 }
 0x1af   :  { %v483_v49 = vadd.f32 %v475_v34, %v458_v43  ;;  %v684_v34 = vmul.f32 2e-05, %v676_v20  ;;  %v703_v43 = vpop.permute.xlu1 %702 }
 0x1b0   :  { %v485_v50 = vadd.f32 %v477_v36, %v460_v44 }
 0x1b1   :  { %534 = vmatprep.subr.mxu0 %v483_v49 }
 0x1b2   :  { %611 = vmatprep.subr.mxu1 %v485_v50  ;;  %535 = vmatpush1.msra.mxu0 %v482_v51 }
 0x1b3   :  { %612 = vmatpush1.msra.mxu1 %v484_v52  ;;  %536 = vmatprep.subr.mxu0 %v479_v53  ;;  %v723_v62 = vpop.permute.xlu1 %722 }
 0x1b4   :  { %613 = vmatprep.subr.mxu1 %v481_v54  ;;  %537 = vmatpush1.msra.mxu0 %v478_v55 }
 0x1b5   :  { %614 = vmatpush1.msra.mxu1 %v480_v56  ;;  %890 = vmatmul.mubr.msk.f32.vlgmr.msra.gmra.mxu0 %vm292_vm2, %v486_v57 }
 0x1b6   :  { %892 = vmatmul.mubr.msk.f32.vlgmr.msra.gmra.mxu1 %vm292_vm2, %v486_v57  ;;  %576 = vmatprep.mubr.f32.mxu0 %v964_v0 }
 0x1b7   :  { %653 = vmatprep.mubr.f32.mxu1 %v964_v0  ;;  %899 = vmatprep.subr.mxu0 %v964_v0 }
 0x1b8   :  { %900 = vmatpush3.msra.mxu0 %v749_v7 }
 0x1b9   :  { %891 = vmatmul.mubr.msk.f32.gmra.mxu0 %vm292_vm2, %v487_v58  ;;  %901 = vmatprep.subr.mxu0 %v964_v0 }
 0x1ba   :  { %893 = vmatmul.mubr.msk.f32.gmra.mxu1 %vm292_vm2, %v487_v58  ;;  %903 = vmatprep.mubr.msk.f32.mxu0 %vm966_vm3, %v964_v0 }
 0x1bb   :  { %902 = vmatpush3.msra.mxu0 %v748_v8 }
 0x275   :  { %v572_v1 = vpop.f32.mrf.mxu0 }
 0x276   :  { %v649_v2 = vpop.f32.mrf.mxu1  ;;  %v573_v3 = vadd.f32 %v572_v1, %v493_v59 }
 0x277   :  { %v650_v5 = vadd.f32 %v649_v2, %v493_v59  ;;  %v574_v9 = vpop.f32.mrf.mxu0 }
 0x278   :  { %v651_v11 = vpop.f32.mrf.mxu1  ;;  %v660_v15 = vmax.f32 %v573_v3, 0.0  ;;  %v575_v17 = vadd.f32 %v574_v9, %v493_v59 }
 0x279   :  { %v662_v16 = vmax.f32 %v650_v5, 0.0  ;;  %v652_v18 = vadd.f32 %v651_v11, %v493_v59  ;;  %v578_v21 = vpop.f32.mrf.mxu0 }
 0x27a   :  { %v655_v23 = vpop.f32.mrf.mxu1  ;;  %v685_v25 = vadd.f32 %v677_v4, %v660_v15  ;;  %v661_v27 = vmax.f32 %v575_v17, 0.0  ;;  %v579_v29 = vadd.f32 %v578_v21, %v498_v14 }
 0x27b   :  { %v687_v26 = vadd.f32 %v679_v6, %v662_v16  ;;  %v663_v28 = vmax.f32 %v652_v18, 0.0  ;;  %v656_v30 = vadd.f32 %v655_v23, %v498_v14  ;;  %v580_v31 = vpop.f32.mrf.mxu0  ;;  %v894_v16 = vld [vmem:[%s1137_s11] ss:$0 sm:$0xff] }
 0x27c   :  { %v657_v33 = vpop.f32.mrf.mxu1  ;;  %v705_v35 = vmul.f32 %v698_v13, %v685_v25  ;;  %v686_v37 = vadd.f32 %v678_v10, %v661_v27  ;;  %v664_v39 = vmax.f32 %v579_v29, 0.0  ;;  %v581_v41 = vadd.f32 %v580_v31, %v498_v14 }
 0x27d   :  { %v707_v36 = vmul.f32 %v698_v13, %v687_v26  ;;  %v688_v38 = vadd.f32 %v680_v12, %v663_v28  ;;  %v666_v40 = vmax.f32 %v656_v30, 0.0  ;;  %v658_v42 = vadd.f32 %v657_v33, %v498_v14 }
 0x27e   :  { %v706_v44 = vmul.f32 %v698_v13, %v686_v37  ;;  %v689_v47 = vadd.f32 %v681_v22, %v664_v39  ;;  %v665_v48 = vmax.f32 %v581_v41, 0.0  ;;  %v725_v52 = vadd.f32 %v718_v46, %v705_v35 }
 0x27f   :  { %v708_v45 = vmul.f32 %v698_v13, %v688_v38  ;;  %v667_v49 = vmax.f32 %v658_v42, 0.0  ;;  %v727_v50 = vadd.f32 %v718_v46, %v707_v36  ;;  %v691_v55 = vadd.f32 %v683_v24, %v666_v40 }
 0x280   :  { %v726_v53 = vadd.f32 %v718_v46, %v706_v44  ;;  %v709_v54 = vmul.f32 %v703_v43, %v689_v47  ;;  %v690_v56 = vadd.f32 %v682_v32, %v665_v48 }
 0x281   :  { %v728_v51 = vadd.f32 %v718_v46, %v708_v45  ;;  %v692_v57 = vadd.f32 %v684_v34, %v667_v49  ;;  %v711_v63 = vmul.f32 %v703_v43, %v691_v55 }
 0x282   :  { %v733_v59 = vmax.f32 %v725_v52, %v726_v53  ;;  %v710_v60 = vmul.f32 %v703_v43, %v690_v56  ;;  %v729_v1 = vadd.f32 %v723_v62, %v709_v54 }
 0x283   :  { %v739_v58 = vmax.f32 %v727_v50, %v728_v51  ;;  %v712_v61 = vmul.f32 %v703_v43, %v692_v57  ;;  %v731_v5 = vadd.f32 %v723_v62, %v711_v63 }
 0x284   :  { %734 = vmax.xlane.f32.xlu0 %v733_v59  ;;  %v730_v2 = vadd.f32 %v723_v62, %v710_v60 }
 0x285   :  { %740 = vmax.xlane.f32.xlu1 %v739_v58  ;;  %v732_v4 = vadd.f32 %v723_v62, %v712_v61 }
 0x286   :  { %v736_v3 = vmax.f32 %v729_v1, %v730_v2 }
 0x287   :  { %v742_v6 = vmax.f32 %v731_v5, %v732_v4 }
 0x288   :  { %737 = vmax.xlane.f32.xlu0 %v736_v3 }
 0x28c   :  { %743 = vmax.xlane.f32.xlu0 %v742_v6 }
 0x30d   :  { %v735_v10 = vpop.xlane.xlu0 %734 }
 0x30e   :  { %v741_v9 = vpop.xlane.xlu1 %740 }
 0x30f   :  { %v746_v11 = vsel %vm745_vm4, %v735_v10, %v741_v9 }
 0x310   :  { %757 = vxpose.xlu1.b32.start [1/2] (short) (narrow) %v746_v11, 8 }
 0x311   :  { %v738_v12 = vpop.xlane.xlu0 %737 }
 0x315   :  { %v744_v13 = vpop.xlane.xlu0 %743 }
 0x316   :  { %v747_v14 = vsel %vm745_vm4, %v738_v12, %v744_v13 }
 0x317   :  { %758 = vxpose.xlu1.b32.end [2/2] (short) (narrow) %v747_v14, 8 }
 0x38f   :  { %v773_v15 = vpop.trf.xlu1 }
 0x390   :  { %904 = vmatmul.mubr.msk.f32.vlgmr.msra.gmra.mxu0 %vm292_vm2, %v773_v15 }
 0x450   :  { %v858_v0 = vpop.f32.mrf.mxu0 }
 0x451   :  { %v859_v17 = vadd.f32 %v894_v16, %v858_v0 }
 0x452   :  { %v905_v18 = vpop.f32.mrf.mxu0 }
 0x453   :  { %862 = vst [vmem:[#allocation5] sm:$0x3] %v859_v17 }
 0x454   :  { %948 = shalt.err (!%p945_p9)
}
 0x455   :  { %872 = dma.vmem_to_hbm [thread:$0]  %s870_s3, 32, %s1138_s12, [#allocation4]  }
 0x456   :  { %959 = dma.done.wait [#allocation4], 32  }
 0x457   :  { %960 = vsyncadd [#allocation4], 4294967264 }
 0x458   :  { %876 = vsyncpa [#allocation3], 1 }
 0x459   :  { %877 = vsyncpa [#allocation4], 1 }

</bundles_post_ra>
